<compile_context>
chip_gen: v5e
topology: v5e:2x2
jax: 0.10.0
libtpu: 0.0.40
codegen_flags: <defaults>
</compile_context>

<pallas_src>
import functools

import jax
import jax.numpy as jnp
from jax.experimental import pallas as pl
from jax.experimental.pallas import tpu as pltpu

INPUT_DIM = 4    # cartpole observation size
H1, H2, H3 = 24, 48, 24
OUTPUT_DIM = 2   # cartpole action count
SUBLANE = 8      # f32 sublane group

# ----------------------------------------------------------------------------
# Packed-weight slab layout: every piece starts at an 8-aligned row offset and
# is zero-padded to the common lane width, so in-kernel static slices are clean
# sublane-aligned / lane-prefix loads.
# ----------------------------------------------------------------------------
_PIECE_SPECS = (
    ("wih1", INPUT_DIM, H1),
    ("whh1", H1, H1),
    ("b1", 1, H1),
    ("wih2", H1, H2),
    ("whh2", H2, H2),
    ("b2", 1, H2),
    ("wih3", H2, H3),
    ("whh3", H3, H3),
    ("b3", 1, H3),
    ("wout", H3, OUTPUT_DIM),
    ("bout", 1, OUTPUT_DIM),
)

SLAB_LANES = max(c for _, _, c in _PIECE_SPECS)  # 48


def _round8(n):
    return ((n + SUBLANE - 1) // SUBLANE) * SUBLANE


def _build_layout():
    layout, off = {}, 0
    for name, rows, cols in _PIECE_SPECS:
        layout[name] = (off, rows, cols)
        off += _round8(rows)
    return layout, off


SLAB_LAYOUT, SLAB_ROWS = _build_layout()  # 232 rows x 48 lanes ~= 44 KB, one DMA


def pack_params(params):
    """One-time packing of all weights/biases into a single VMEM-friendly slab."""
    blocks = []
    for name, rows, cols in _PIECE_SPECS:
        p = jnp.asarray(params[name], jnp.float32).reshape(rows, cols)
        blocks.append(jnp.pad(p, ((0, _round8(rows) - rows), (0, SLAB_LANES - cols))))
    return jnp.concatenate(blocks, axis=0)


# ----------------------------------------------------------------------------
# Kernel
# ----------------------------------------------------------------------------
def rnn_dqn_kernel(seq_len, batch, x_ref, slab_ref, out_ref):
    """Fused 3-layer ReLU RNN + Linear head, wavefront-scheduled, vreg-resident.

    x_ref:    (T*B, INPUT_DIM)  time-major.
    slab_ref: (SLAB_ROWS, SLAB_LANES) packed weights/biases.
    out_ref:  (T*B, OUTPUT_DIM)
    """
    T, B = seq_len, batch
    f32 = jnp.float32

    def piece(name):
        off, rows, cols = SLAB_LAYOUT[name]
        return slab_ref[off:off + rows, 0:cols]  # static, 8-aligned slice load

    wih1, whh1, b1 = piece("wih1"), piece("whh1"), piece("b1")      # (4,24) (24,24) (1,24)
    wih2, whh2 = piece("wih2"), piece("whh2")                        # (24,48) (48,48)
    wih3, whh3 = piece("wih3"), piece("whh3")                        # (48,24) (24,24)
    wout, bout = piece("wout"), piece("bout")                        # (24,2)  (1,2)
    # Hoist bias broadcasts out of the unrolled loop (JAX does not CSE them).
    b2 = jnp.broadcast_to(piece("b2"), (B, H2))
    b3 = jnp.broadcast_to(piece("b3"), (B, H3))

    # Layer-1 input projection + bias for ALL timesteps in one matmul
    # (independent of the recurrence -> off the serial critical path).
    x1all = jnp.dot(x_ref[...], wih1, preferred_element_type=f32) + b1   # (T*B, 24)

    # Fully unrolled time-major sweep. Per-step projections for layers 2/3 give a
    # layer/time wavefront DAG: three independent recurrent MXU chains in flight.
    h1 = h2 = h3 = None
    h3_steps = []
    for t in range(T):
        z1 = x1all[t * B:(t + 1) * B, :]
        if h1 is not None:
            z1 = z1 + jnp.dot(h1, whh1, preferred_element_type=f32)
        h1 = jnp.maximum(z1, 0.0)

        z2 = jnp.dot(h1, wih2, preferred_element_type=f32) + b2
        if h2 is not None:
            z2 = z2 + jnp.dot(h2, whh2, preferred_element_type=f32)
        h2 = jnp.maximum(z2, 0.0)

        z3 = jnp.dot(h2, wih3, preferred_element_type=f32) + b3
        if h3 is not None:
            z3 = z3 + jnp.dot(h3, whh3, preferred_element_type=f32)
        h3 = jnp.maximum(z3, 0.0)
        h3_steps.append(h3)

    # Output head: one matmul over all timesteps + one store (lane width 2 is a
    # masked store, but it is a single store at this size — acceptable).
    h3_all = jnp.concatenate(h3_steps, axis=0)                           # (T*B, 24)
    out_ref[...] = (jnp.dot(h3_all, wout, preferred_element_type=f32)
                    + bout).astype(out_ref.dtype)


# ----------------------------------------------------------------------------
# Wrapper
# ----------------------------------------------------------------------------
@jax.jit
def cartpole_rnn_dqn_forward(x, slab):
    """x: (seq, batch, INPUT_DIM), slab: packed params. Returns (seq, batch, 2)."""
    x = x.astype(jnp.float32)
    T, B, _ = x.shape
    x2d = x.reshape(T * B, INPUT_DIM)  # contiguous reshape: metadata only, no copy

    vmem = pl.BlockSpec(memory_space=pltpu.MemorySpace.VMEM)
    out2d = pl.pallas_call(
        functools.partial(rnn_dqn_kernel, T, B),
        out_shape=jax.ShapeDtypeStruct((T * B, OUTPUT_DIM), jnp.float32),
        in_specs=[vmem, vmem],
        out_specs=vmem,
        compiler_params=pltpu.CompilerParams(
            vmem_limit_bytes=8 * 1024 * 1024),  # footprint ~50 KB; keep scoped VMEM tight
    )(x2d, slab)

    return out2d.reshape(T, B, OUTPUT_DIM)     # contiguous reshape: metadata only


# ----------------------------------------------------------------------------
# Params / reference
# ----------------------------------------------------------------------------
def init_params(key):
    """Deterministic PyTorch-style uniform(-1/sqrt(H), 1/sqrt(H)) init.

    Weights stored pre-transposed ((in, out) instead of PyTorch's (out, in)) and
    the two RNN biases (b_ih + b_hh) pre-summed into one (1, H) row.
    """
    def unif(k, shape, fan):
        bound = 1.0 / jnp.sqrt(jnp.float32(fan))
        return jax.random.uniform(k, shape, jnp.float32, -bound, bound)

    ks = jax.random.split(key, 16)
    p = {}
    # layer 1: RNN(4 -> 24)
    p["wih1"] = unif(ks[0], (INPUT_DIM, H1), H1)
    p["whh1"] = unif(ks[1], (H1, H1), H1)
    p["b1"]   = unif(ks[2], (1, H1), H1) + unif(ks[3], (1, H1), H1)
    # layer 2: RNN(24 -> 48)
    p["wih2"] = unif(ks[4], (H1, H2), H2)
    p["whh2"] = unif(ks[5], (H2, H2), H2)
    p["b2"]   = unif(ks[6], (1, H2), H2) + unif(ks[7], (1, H2), H2)
    # layer 3: RNN(48 -> 24)
    p["wih3"] = unif(ks[8], (H2, H3), H3)
    p["whh3"] = unif(ks[9], (H3, H3), H3)
    p["b3"]   = unif(ks[10], (1, H3), H3) + unif(ks[11], (1, H3), H3)
    # output: Linear(24 -> 2)
    p["wout"] = unif(ks[12], (H3, OUTPUT_DIM), H3)
    p["bout"] = unif(ks[13], (1, OUTPUT_DIM), H3)
    return p


def reference_forward(x, p):
    """Pure-JAX reference of the same semantics (for verification)."""
    x = x.astype(jnp.float32)
    T, B, _ = x.shape
    h1 = jnp.zeros((B, H1)); h2 = jnp.zeros((B, H2)); h3 = jnp.zeros((B, H3))
    outs = []
    for t in range(T):
        h1 = jax.nn.relu(x[t] @ p["wih1"] + h1 @ p["whh1"] + p["b1"])
        h2 = jax.nn.relu(h1 @ p["wih2"] + h2 @ p["whh2"] + p["b2"])
        h3 = jax.nn.relu(h2 @ p["wih3"] + h3 @ p["whh3"] + p["b3"])
        outs.append(h3 @ p["wout"] + p["bout"])
    return jnp.stack(outs, axis=0)


if __name__ == "__main__":
    key = jax.random.PRNGKey(0)
    k_params, k_x = jax.random.split(key)
    params = init_params(k_params)
    slab = pack_params(params)          # one-time packing, reused across calls
    slab = jax.block_until_ready(slab)

    SEQ, BATCH = 8, 2
    x = jax.random.normal(k_x, (SEQ, BATCH, INPUT_DIM), dtype=jnp.float32)

    out = cartpole_rnn_dqn_forward(x, slab)
    out = jax.block_until_ready(out)

    ref = reference_forward(x, params)
    assert out.shape == (SEQ, BATCH, OUTPUT_DIM)
    assert jnp.allclose(out, ref, atol=1e-5, rtol=1e-5)

    print("KERNEL_OK")
</pallas_src>

<mosaic_0001>
module attributes {stable_mosaic.version = 11 : i64} {
  func.func @rnn_dqn_kernel(%arg0: memref<16x4xf32, #tpu.memory_space<vmem>>, %arg1: memref<232x48xf32, #tpu.memory_space<vmem>>, %arg2: memref<16x2xf32, #tpu.memory_space<vmem>>) attributes {dimension_semantics = [], scalar_prefetch = 0 : i64, scratch_operands = 0 : i64, tpu.core_type = #tpu.core_type<tc>} {
    %c0 = arith.constant 0 : index
    %c0_0 = arith.constant 0 : index
    %0 = vector.load %arg1[%c0, %c0_0] : memref<232x48xf32, #tpu.memory_space<vmem>>, vector<4x24xf32>
    %c8 = arith.constant 8 : index
    %c0_1 = arith.constant 0 : index
    %1 = vector.load %arg1[%c8, %c0_1] : memref<232x48xf32, #tpu.memory_space<vmem>>, vector<24x24xf32>
    %c32 = arith.constant 32 : index
    %c0_2 = arith.constant 0 : index
    %2 = vector.load %arg1[%c32, %c0_2] : memref<232x48xf32, #tpu.memory_space<vmem>>, vector<1x24xf32>
    %c40 = arith.constant 40 : index
    %c0_3 = arith.constant 0 : index
    %3 = vector.load %arg1[%c40, %c0_3] : memref<232x48xf32, #tpu.memory_space<vmem>>, vector<24x48xf32>
    %c64 = arith.constant 64 : index
    %c0_4 = arith.constant 0 : index
    %4 = vector.load %arg1[%c64, %c0_4] : memref<232x48xf32, #tpu.memory_space<vmem>>, vector<48x48xf32>
    %c120 = arith.constant 120 : index
    %c0_5 = arith.constant 0 : index
    %5 = vector.load %arg1[%c120, %c0_5] : memref<232x48xf32, #tpu.memory_space<vmem>>, vector<48x24xf32>
    %c168 = arith.constant 168 : index
    %c0_6 = arith.constant 0 : index
    %6 = vector.load %arg1[%c168, %c0_6] : memref<232x48xf32, #tpu.memory_space<vmem>>, vector<24x24xf32>
    %c200 = arith.constant 200 : index
    %c0_7 = arith.constant 0 : index
    %7 = vector.load %arg1[%c200, %c0_7] : memref<232x48xf32, #tpu.memory_space<vmem>>, vector<24x2xf32>
    %c224 = arith.constant 224 : index
    %c0_8 = arith.constant 0 : index
    %8 = vector.load %arg1[%c224, %c0_8] : memref<232x48xf32, #tpu.memory_space<vmem>>, vector<1x2xf32>
    %c112 = arith.constant 112 : index
    %c0_9 = arith.constant 0 : index
    %9 = vector.load %arg1[%c112, %c0_9] : memref<232x48xf32, #tpu.memory_space<vmem>>, vector<1x48xf32>
    %10 = vector.shape_cast %9 : vector<1x48xf32> to vector<1x48xf32>
    %11 = vector.broadcast %10 : vector<1x48xf32> to vector<2x48xf32>
    %c192 = arith.constant 192 : index
    %c0_10 = arith.constant 0 : index
    %12 = vector.load %arg1[%c192, %c0_10] : memref<232x48xf32, #tpu.memory_space<vmem>>, vector<1x24xf32>
    %13 = vector.shape_cast %12 : vector<1x24xf32> to vector<1x24xf32>
    %14 = vector.broadcast %13 : vector<1x24xf32> to vector<2x24xf32>
    %c0_11 = arith.constant 0 : index
    %c0_12 = arith.constant 0 : index
    %15 = vector.load %arg0[%c0_11, %c0_12] : memref<16x4xf32, #tpu.memory_space<vmem>>, vector<16x4xf32>
    %cst = arith.constant dense<0.000000e+00> : vector<16x24xf32>
    %16 = tpu.matmul %15, %0, %cst {dimension_numbers = #tpu.dot_dimension_numbers<[1], [0], [0], [1], [0, 0, 1, 1], [], []>} : vector<16x4xf32>, vector<4x24xf32>, vector<16x24xf32> -> vector<16x24xf32>
    %17 = vector.broadcast %2 : vector<1x24xf32> to vector<16x24xf32>
    %18 = arith.addf %16, %17 : vector<16x24xf32>
    %19 = vector.extract_strided_slice %18 {offsets = [0, 0], sizes = [2, 24], strides = [1, 1]} : vector<16x24xf32> to vector<2x24xf32>
    %cst_13 = arith.constant 0.000000e+00 : f32
    %20 = vector.broadcast %cst_13 : f32 to vector<2x24xf32>
    %21 = arith.maximumf %19, %20 : vector<2x24xf32>
    %cst_14 = arith.constant dense<0.000000e+00> : vector<2x48xf32>
    %22 = tpu.matmul %21, %3, %cst_14 {dimension_numbers = #tpu.dot_dimension_numbers<[1], [0], [0], [1], [0, 0, 1, 1], [], []>} : vector<2x24xf32>, vector<24x48xf32>, vector<2x48xf32> -> vector<2x48xf32>
    %23 = arith.addf %22, %11 : vector<2x48xf32>
    %cst_15 = arith.constant 0.000000e+00 : f32
    %24 = vector.broadcast %cst_15 : f32 to vector<2x48xf32>
    %25 = arith.maximumf %23, %24 : vector<2x48xf32>
    %cst_16 = arith.constant dense<0.000000e+00> : vector<2x24xf32>
    %26 = tpu.matmul %25, %5, %cst_16 {dimension_numbers = #tpu.dot_dimension_numbers<[1], [0], [0], [1], [0, 0, 1, 1], [], []>} : vector<2x48xf32>, vector<48x24xf32>, vector<2x24xf32> -> vector<2x24xf32>
    %27 = arith.addf %26, %14 : vector<2x24xf32>
    %cst_17 = arith.constant 0.000000e+00 : f32
    %28 = vector.broadcast %cst_17 : f32 to vector<2x24xf32>
    %29 = arith.maximumf %27, %28 : vector<2x24xf32>
    %30 = vector.extract_strided_slice %18 {offsets = [2, 0], sizes = [2, 24], strides = [1, 1]} : vector<16x24xf32> to vector<2x24xf32>
    %cst_18 = arith.constant dense<0.000000e+00> : vector<2x24xf32>
    %31 = tpu.matmul %21, %1, %cst_18 {dimension_numbers = #tpu.dot_dimension_numbers<[1], [0], [0], [1], [0, 0, 1, 1], [], []>} : vector<2x24xf32>, vector<24x24xf32>, vector<2x24xf32> -> vector<2x24xf32>
    %32 = arith.addf %30, %31 : vector<2x24xf32>
    %cst_19 = arith.constant 0.000000e+00 : f32
    %33 = vector.broadcast %cst_19 : f32 to vector<2x24xf32>
    %34 = arith.maximumf %32, %33 : vector<2x24xf32>
    %cst_20 = arith.constant dense<0.000000e+00> : vector<2x48xf32>
    %35 = tpu.matmul %34, %3, %cst_20 {dimension_numbers = #tpu.dot_dimension_numbers<[1], [0], [0], [1], [0, 0, 1, 1], [], []>} : vector<2x24xf32>, vector<24x48xf32>, vector<2x48xf32> -> vector<2x48xf32>
    %36 = arith.addf %35, %11 : vector<2x48xf32>
    %cst_21 = arith.constant dense<0.000000e+00> : vector<2x48xf32>
    %37 = tpu.matmul %25, %4, %cst_21 {dimension_numbers = #tpu.dot_dimension_numbers<[1], [0], [0], [1], [0, 0, 1, 1], [], []>} : vector<2x48xf32>, vector<48x48xf32>, vector<2x48xf32> -> vector<2x48xf32>
    %38 = arith.addf %36, %37 : vector<2x48xf32>
    %cst_22 = arith.constant 0.000000e+00 : f32
    %39 = vector.broadcast %cst_22 : f32 to vector<2x48xf32>
    %40 = arith.maximumf %38, %39 : vector<2x48xf32>
    %cst_23 = arith.constant dense<0.000000e+00> : vector<2x24xf32>
    %41 = tpu.matmul %40, %5, %cst_23 {dimension_numbers = #tpu.dot_dimension_numbers<[1], [0], [0], [1], [0, 0, 1, 1], [], []>} : vector<2x48xf32>, vector<48x24xf32>, vector<2x24xf32> -> vector<2x24xf32>
    %42 = arith.addf %41, %14 : vector<2x24xf32>
    %cst_24 = arith.constant dense<0.000000e+00> : vector<2x24xf32>
    %43 = tpu.matmul %29, %6, %cst_24 {dimension_numbers = #tpu.dot_dimension_numbers<[1], [0], [0], [1], [0, 0, 1, 1], [], []>} : vector<2x24xf32>, vector<24x24xf32>, vector<2x24xf32> -> vector<2x24xf32>
    %44 = arith.addf %42, %43 : vector<2x24xf32>
    %cst_25 = arith.constant 0.000000e+00 : f32
    %45 = vector.broadcast %cst_25 : f32 to vector<2x24xf32>
    %46 = arith.maximumf %44, %45 : vector<2x24xf32>
    %47 = vector.extract_strided_slice %18 {offsets = [4, 0], sizes = [2, 24], strides = [1, 1]} : vector<16x24xf32> to vector<2x24xf32>
    %cst_26 = arith.constant dense<0.000000e+00> : vector<2x24xf32>
    %48 = tpu.matmul %34, %1, %cst_26 {dimension_numbers = #tpu.dot_dimension_numbers<[1], [0], [0], [1], [0, 0, 1, 1], [], []>} : vector<2x24xf32>, vector<24x24xf32>, vector<2x24xf32> -> vector<2x24xf32>
    %49 = arith.addf %47, %48 : vector<2x24xf32>
    %cst_27 = arith.constant 0.000000e+00 : f32
    %50 = vector.broadcast %cst_27 : f32 to vector<2x24xf32>
    %51 = arith.maximumf %49, %50 : vector<2x24xf32>
    %cst_28 = arith.constant dense<0.000000e+00> : vector<2x48xf32>
    %52 = tpu.matmul %51, %3, %cst_28 {dimension_numbers = #tpu.dot_dimension_numbers<[1], [0], [0], [1], [0, 0, 1, 1], [], []>} : vector<2x24xf32>, vector<24x48xf32>, vector<2x48xf32> -> vector<2x48xf32>
    %53 = arith.addf %52, %11 : vector<2x48xf32>
    %cst_29 = arith.constant dense<0.000000e+00> : vector<2x48xf32>
    %54 = tpu.matmul %40, %4, %cst_29 {dimension_numbers = #tpu.dot_dimension_numbers<[1], [0], [0], [1], [0, 0, 1, 1], [], []>} : vector<2x48xf32>, vector<48x48xf32>, vector<2x48xf32> -> vector<2x48xf32>
    %55 = arith.addf %53, %54 : vector<2x48xf32>
    %cst_30 = arith.constant 0.000000e+00 : f32
    %56 = vector.broadcast %cst_30 : f32 to vector<2x48xf32>
    %57 = arith.maximumf %55, %56 : vector<2x48xf32>
    %cst_31 = arith.constant dense<0.000000e+00> : vector<2x24xf32>
    %58 = tpu.matmul %57, %5, %cst_31 {dimension_numbers = #tpu.dot_dimension_numbers<[1], [0], [0], [1], [0, 0, 1, 1], [], []>} : vector<2x48xf32>, vector<48x24xf32>, vector<2x24xf32> -> vector<2x24xf32>
    %59 = arith.addf %58, %14 : vector<2x24xf32>
    %cst_32 = arith.constant dense<0.000000e+00> : vector<2x24xf32>
    %60 = tpu.matmul %46, %6, %cst_32 {dimension_numbers = #tpu.dot_dimension_numbers<[1], [0], [0], [1], [0, 0, 1, 1], [], []>} : vector<2x24xf32>, vector<24x24xf32>, vector<2x24xf32> -> vector<2x24xf32>
    %61 = arith.addf %59, %60 : vector<2x24xf32>
    %cst_33 = arith.constant 0.000000e+00 : f32
    %62 = vector.broadcast %cst_33 : f32 to vector<2x24xf32>
    %63 = arith.maximumf %61, %62 : vector<2x24xf32>
    %64 = vector.extract_strided_slice %18 {offsets = [6, 0], sizes = [2, 24], strides = [1, 1]} : vector<16x24xf32> to vector<2x24xf32>
    %cst_34 = arith.constant dense<0.000000e+00> : vector<2x24xf32>
    %65 = tpu.matmul %51, %1, %cst_34 {dimension_numbers = #tpu.dot_dimension_numbers<[1], [0], [0], [1], [0, 0, 1, 1], [], []>} : vector<2x24xf32>, vector<24x24xf32>, vector<2x24xf32> -> vector<2x24xf32>
    %66 = arith.addf %64, %65 : vector<2x24xf32>
    %cst_35 = arith.constant 0.000000e+00 : f32
    %67 = vector.broadcast %cst_35 : f32 to vector<2x24xf32>
    %68 = arith.maximumf %66, %67 : vector<2x24xf32>
    %cst_36 = arith.constant dense<0.000000e+00> : vector<2x48xf32>
    %69 = tpu.matmul %68, %3, %cst_36 {dimension_numbers = #tpu.dot_dimension_numbers<[1], [0], [0], [1], [0, 0, 1, 1], [], []>} : vector<2x24xf32>, vector<24x48xf32>, vector<2x48xf32> -> vector<2x48xf32>
    %70 = arith.addf %69, %11 : vector<2x48xf32>
    %cst_37 = arith.constant dense<0.000000e+00> : vector<2x48xf32>
    %71 = tpu.matmul %57, %4, %cst_37 {dimension_numbers = #tpu.dot_dimension_numbers<[1], [0], [0], [1], [0, 0, 1, 1], [], []>} : vector<2x48xf32>, vector<48x48xf32>, vector<2x48xf32> -> vector<2x48xf32>
    %72 = arith.addf %70, %71 : vector<2x48xf32>
    %cst_38 = arith.constant 0.000000e+00 : f32
    %73 = vector.broadcast %cst_38 : f32 to vector<2x48xf32>
    %74 = arith.maximumf %72, %73 : vector<2x48xf32>
    %cst_39 = arith.constant dense<0.000000e+00> : vector<2x24xf32>
    %75 = tpu.matmul %74, %5, %cst_39 {dimension_numbers = #tpu.dot_dimension_numbers<[1], [0], [0], [1], [0, 0, 1, 1], [], []>} : vector<2x48xf32>, vector<48x24xf32>, vector<2x24xf32> -> vector<2x24xf32>
    %76 = arith.addf %75, %14 : vector<2x24xf32>
    %cst_40 = arith.constant dense<0.000000e+00> : vector<2x24xf32>
    %77 = tpu.matmul %63, %6, %cst_40 {dimension_numbers = #tpu.dot_dimension_numbers<[1], [0], [0], [1], [0, 0, 1, 1], [], []>} : vector<2x24xf32>, vector<24x24xf32>, vector<2x24xf32> -> vector<2x24xf32>
    %78 = arith.addf %76, %77 : vector<2x24xf32>
    %cst_41 = arith.constant 0.000000e+00 : f32
    %79 = vector.broadcast %cst_41 : f32 to vector<2x24xf32>
    %80 = arith.maximumf %78, %79 : vector<2x24xf32>
    %81 = vector.extract_strided_slice %18 {offsets = [8, 0], sizes = [2, 24], strides = [1, 1]} : vector<16x24xf32> to vector<2x24xf32>
    %cst_42 = arith.constant dense<0.000000e+00> : vector<2x24xf32>
    %82 = tpu.matmul %68, %1, %cst_42 {dimension_numbers = #tpu.dot_dimension_numbers<[1], [0], [0], [1], [0, 0, 1, 1], [], []>} : vector<2x24xf32>, vector<24x24xf32>, vector<2x24xf32> -> vector<2x24xf32>
    %83 = arith.addf %81, %82 : vector<2x24xf32>
    %cst_43 = arith.constant 0.000000e+00 : f32
    %84 = vector.broadcast %cst_43 : f32 to vector<2x24xf32>
    %85 = arith.maximumf %83, %84 : vector<2x24xf32>
    %cst_44 = arith.constant dense<0.000000e+00> : vector<2x48xf32>
    %86 = tpu.matmul %85, %3, %cst_44 {dimension_numbers = #tpu.dot_dimension_numbers<[1], [0], [0], [1], [0, 0, 1, 1], [], []>} : vector<2x24xf32>, vector<24x48xf32>, vector<2x48xf32> -> vector<2x48xf32>
    %87 = arith.addf %86, %11 : vector<2x48xf32>
    %cst_45 = arith.constant dense<0.000000e+00> : vector<2x48xf32>
    %88 = tpu.matmul %74, %4, %cst_45 {dimension_numbers = #tpu.dot_dimension_numbers<[1], [0], [0], [1], [0, 0, 1, 1], [], []>} : vector<2x48xf32>, vector<48x48xf32>, vector<2x48xf32> -> vector<2x48xf32>
    %89 = arith.addf %87, %88 : vector<2x48xf32>
    %cst_46 = arith.constant 0.000000e+00 : f32
    %90 = vector.broadcast %cst_46 : f32 to vector<2x48xf32>
    %91 = arith.maximumf %89, %90 : vector<2x48xf32>
    %cst_47 = arith.constant dense<0.000000e+00> : vector<2x24xf32>
    %92 = tpu.matmul %91, %5, %cst_47 {dimension_numbers = #tpu.dot_dimension_numbers<[1], [0], [0], [1], [0, 0, 1, 1], [], []>} : vector<2x48xf32>, vector<48x24xf32>, vector<2x24xf32> -> vector<2x24xf32>
    %93 = arith.addf %92, %14 : vector<2x24xf32>
    %cst_48 = arith.constant dense<0.000000e+00> : vector<2x24xf32>
    %94 = tpu.matmul %80, %6, %cst_48 {dimension_numbers = #tpu.dot_dimension_numbers<[1], [0], [0], [1], [0, 0, 1, 1], [], []>} : vector<2x24xf32>, vector<24x24xf32>, vector<2x24xf32> -> vector<2x24xf32>
    %95 = arith.addf %93, %94 : vector<2x24xf32>
    %cst_49 = arith.constant 0.000000e+00 : f32
    %96 = vector.broadcast %cst_49 : f32 to vector<2x24xf32>
    %97 = arith.maximumf %95, %96 : vector<2x24xf32>
    %98 = vector.extract_strided_slice %18 {offsets = [10, 0], sizes = [2, 24], strides = [1, 1]} : vector<16x24xf32> to vector<2x24xf32>
    %cst_50 = arith.constant dense<0.000000e+00> : vector<2x24xf32>
    %99 = tpu.matmul %85, %1, %cst_50 {dimension_numbers = #tpu.dot_dimension_numbers<[1], [0], [0], [1], [0, 0, 1, 1], [], []>} : vector<2x24xf32>, vector<24x24xf32>, vector<2x24xf32> -> vector<2x24xf32>
    %100 = arith.addf %98, %99 : vector<2x24xf32>
    %cst_51 = arith.constant 0.000000e+00 : f32
    %101 = vector.broadcast %cst_51 : f32 to vector<2x24xf32>
    %102 = arith.maximumf %100, %101 : vector<2x24xf32>
    %cst_52 = arith.constant dense<0.000000e+00> : vector<2x48xf32>
    %103 = tpu.matmul %102, %3, %cst_52 {dimension_numbers = #tpu.dot_dimension_numbers<[1], [0], [0], [1], [0, 0, 1, 1], [], []>} : vector<2x24xf32>, vector<24x48xf32>, vector<2x48xf32> -> vector<2x48xf32>
    %104 = arith.addf %103, %11 : vector<2x48xf32>
    %cst_53 = arith.constant dense<0.000000e+00> : vector<2x48xf32>
    %105 = tpu.matmul %91, %4, %cst_53 {dimension_numbers = #tpu.dot_dimension_numbers<[1], [0], [0], [1], [0, 0, 1, 1], [], []>} : vector<2x48xf32>, vector<48x48xf32>, vector<2x48xf32> -> vector<2x48xf32>
    %106 = arith.addf %104, %105 : vector<2x48xf32>
    %cst_54 = arith.constant 0.000000e+00 : f32
    %107 = vector.broadcast %cst_54 : f32 to vector<2x48xf32>
    %108 = arith.maximumf %106, %107 : vector<2x48xf32>
    %cst_55 = arith.constant dense<0.000000e+00> : vector<2x24xf32>
    %109 = tpu.matmul %108, %5, %cst_55 {dimension_numbers = #tpu.dot_dimension_numbers<[1], [0], [0], [1], [0, 0, 1, 1], [], []>} : vector<2x48xf32>, vector<48x24xf32>, vector<2x24xf32> -> vector<2x24xf32>
    %110 = arith.addf %109, %14 : vector<2x24xf32>
    %cst_56 = arith.constant dense<0.000000e+00> : vector<2x24xf32>
    %111 = tpu.matmul %97, %6, %cst_56 {dimension_numbers = #tpu.dot_dimension_numbers<[1], [0], [0], [1], [0, 0, 1, 1], [], []>} : vector<2x24xf32>, vector<24x24xf32>, vector<2x24xf32> -> vector<2x24xf32>
    %112 = arith.addf %110, %111 : vector<2x24xf32>
    %cst_57 = arith.constant 0.000000e+00 : f32
    %113 = vector.broadcast %cst_57 : f32 to vector<2x24xf32>
    %114 = arith.maximumf %112, %113 : vector<2x24xf32>
    %115 = vector.extract_strided_slice %18 {offsets = [12, 0], sizes = [2, 24], strides = [1, 1]} : vector<16x24xf32> to vector<2x24xf32>
    %cst_58 = arith.constant dense<0.000000e+00> : vector<2x24xf32>
    %116 = tpu.matmul %102, %1, %cst_58 {dimension_numbers = #tpu.dot_dimension_numbers<[1], [0], [0], [1], [0, 0, 1, 1], [], []>} : vector<2x24xf32>, vector<24x24xf32>, vector<2x24xf32> -> vector<2x24xf32>
    %117 = arith.addf %115, %116 : vector<2x24xf32>
    %cst_59 = arith.constant 0.000000e+00 : f32
    %118 = vector.broadcast %cst_59 : f32 to vector<2x24xf32>
    %119 = arith.maximumf %117, %118 : vector<2x24xf32>
    %cst_60 = arith.constant dense<0.000000e+00> : vector<2x48xf32>
    %120 = tpu.matmul %119, %3, %cst_60 {dimension_numbers = #tpu.dot_dimension_numbers<[1], [0], [0], [1], [0, 0, 1, 1], [], []>} : vector<2x24xf32>, vector<24x48xf32>, vector<2x48xf32> -> vector<2x48xf32>
    %121 = arith.addf %120, %11 : vector<2x48xf32>
    %cst_61 = arith.constant dense<0.000000e+00> : vector<2x48xf32>
    %122 = tpu.matmul %108, %4, %cst_61 {dimension_numbers = #tpu.dot_dimension_numbers<[1], [0], [0], [1], [0, 0, 1, 1], [], []>} : vector<2x48xf32>, vector<48x48xf32>, vector<2x48xf32> -> vector<2x48xf32>
    %123 = arith.addf %121, %122 : vector<2x48xf32>
    %cst_62 = arith.constant 0.000000e+00 : f32
    %124 = vector.broadcast %cst_62 : f32 to vector<2x48xf32>
    %125 = arith.maximumf %123, %124 : vector<2x48xf32>
    %cst_63 = arith.constant dense<0.000000e+00> : vector<2x24xf32>
    %126 = tpu.matmul %125, %5, %cst_63 {dimension_numbers = #tpu.dot_dimension_numbers<[1], [0], [0], [1], [0, 0, 1, 1], [], []>} : vector<2x48xf32>, vector<48x24xf32>, vector<2x24xf32> -> vector<2x24xf32>
    %127 = arith.addf %126, %14 : vector<2x24xf32>
    %cst_64 = arith.constant dense<0.000000e+00> : vector<2x24xf32>
    %128 = tpu.matmul %114, %6, %cst_64 {dimension_numbers = #tpu.dot_dimension_numbers<[1], [0], [0], [1], [0, 0, 1, 1], [], []>} : vector<2x24xf32>, vector<24x24xf32>, vector<2x24xf32> -> vector<2x24xf32>
    %129 = arith.addf %127, %128 : vector<2x24xf32>
    %cst_65 = arith.constant 0.000000e+00 : f32
    %130 = vector.broadcast %cst_65 : f32 to vector<2x24xf32>
    %131 = arith.maximumf %129, %130 : vector<2x24xf32>
    %132 = vector.extract_strided_slice %18 {offsets = [14, 0], sizes = [2, 24], strides = [1, 1]} : vector<16x24xf32> to vector<2x24xf32>
    %cst_66 = arith.constant dense<0.000000e+00> : vector<2x24xf32>
    %133 = tpu.matmul %119, %1, %cst_66 {dimension_numbers = #tpu.dot_dimension_numbers<[1], [0], [0], [1], [0, 0, 1, 1], [], []>} : vector<2x24xf32>, vector<24x24xf32>, vector<2x24xf32> -> vector<2x24xf32>
    %134 = arith.addf %132, %133 : vector<2x24xf32>
    %cst_67 = arith.constant 0.000000e+00 : f32
    %135 = vector.broadcast %cst_67 : f32 to vector<2x24xf32>
    %136 = arith.maximumf %134, %135 : vector<2x24xf32>
    %cst_68 = arith.constant dense<0.000000e+00> : vector<2x48xf32>
    %137 = tpu.matmul %136, %3, %cst_68 {dimension_numbers = #tpu.dot_dimension_numbers<[1], [0], [0], [1], [0, 0, 1, 1], [], []>} : vector<2x24xf32>, vector<24x48xf32>, vector<2x48xf32> -> vector<2x48xf32>
    %138 = arith.addf %137, %11 : vector<2x48xf32>
    %cst_69 = arith.constant dense<0.000000e+00> : vector<2x48xf32>
    %139 = tpu.matmul %125, %4, %cst_69 {dimension_numbers = #tpu.dot_dimension_numbers<[1], [0], [0], [1], [0, 0, 1, 1], [], []>} : vector<2x48xf32>, vector<48x48xf32>, vector<2x48xf32> -> vector<2x48xf32>
    %140 = arith.addf %138, %139 : vector<2x48xf32>
    %cst_70 = arith.constant 0.000000e+00 : f32
    %141 = vector.broadcast %cst_70 : f32 to vector<2x48xf32>
    %142 = arith.maximumf %140, %141 : vector<2x48xf32>
    %cst_71 = arith.constant dense<0.000000e+00> : vector<2x24xf32>
    %143 = tpu.matmul %142, %5, %cst_71 {dimension_numbers = #tpu.dot_dimension_numbers<[1], [0], [0], [1], [0, 0, 1, 1], [], []>} : vector<2x48xf32>, vector<48x24xf32>, vector<2x24xf32> -> vector<2x24xf32>
    %144 = arith.addf %143, %14 : vector<2x24xf32>
    %cst_72 = arith.constant dense<0.000000e+00> : vector<2x24xf32>
    %145 = tpu.matmul %131, %6, %cst_72 {dimension_numbers = #tpu.dot_dimension_numbers<[1], [0], [0], [1], [0, 0, 1, 1], [], []>} : vector<2x24xf32>, vector<24x24xf32>, vector<2x24xf32> -> vector<2x24xf32>
    %146 = arith.addf %144, %145 : vector<2x24xf32>
    %cst_73 = arith.constant 0.000000e+00 : f32
    %147 = vector.broadcast %cst_73 : f32 to vector<2x24xf32>
    %148 = arith.maximumf %146, %147 : vector<2x24xf32>
    %149 = tpu.concatenate %29, %46, %63, %80, %97, %114, %131, %148 in 0 : vector<2x24xf32>, vector<2x24xf32>, vector<2x24xf32>, vector<2x24xf32>, vector<2x24xf32>, vector<2x24xf32>, vector<2x24xf32>, vector<2x24xf32> -> vector<16x24xf32>
    %cst_74 = arith.constant dense<0.000000e+00> : vector<16x2xf32>
    %150 = tpu.matmul %149, %7, %cst_74 {dimension_numbers = #tpu.dot_dimension_numbers<[1], [0], [0], [1], [0, 0, 1, 1], [], []>} : vector<16x24xf32>, vector<24x2xf32>, vector<16x2xf32> -> vector<16x2xf32>
    %151 = vector.broadcast %8 : vector<1x2xf32> to vector<16x2xf32>
    %152 = arith.addf %150, %151 : vector<16x2xf32>
    %c0_75 = arith.constant 0 : index
    %c0_76 = arith.constant 0 : index
    %153 = vector.load %arg2[%c0_75, %c0_76] : memref<16x2xf32, #tpu.memory_space<vmem>>, vector<16x2xf32>
    tpu.vector_store %arg2[%c0_75, %c0_76], %152 {strides = array<i32>} : memref<16x2xf32, #tpu.memory_space<vmem>>, vector<16x2xf32>,
    return
  }
}

</mosaic_0001>

<bundles_post_ra>
// kernel: cartpole_rnn_dqn_forward.1
= control target key start
LH: loop header
LB: loop body
LE: loop exit
PB: predicated region body
PF: predicated region fallthrough
CT: control target
= control target key end

     0   :  { %vm52_vm0 = vcmask 1043456   ;;  %vm45_vm1 = vcmask 31744   ;;  %vm80_vm2 = vcmask 195584   ;;  %vm105_vm3 = vcmask 392192   ;;  %s1479_s1 = inlined_call_operand.vmem [shape: f32[232,48], index: 1, kind: input, shape index: {}]   ;;  %s1480_s0 = inlined_call_operand.vmem [shape: f32[16,4], index: 0, kind: input, shape index: {}]   ;;  %s1481_s2 = inlined_call_operand.vmem [shape: f32[16,2], index: 2, kind: output, shape index: {}]  }
   0x1   :  { %v11_v0 = vld [vmem:[%s1479_s1] sm:$0xf]  ;;  %v1089_v2 = vld [vmem:[%s1479_s1 + $0x38] sm:$0xff]  ;;  %v1101_v4 = vld [vmem:[%s1479_s1 + $0x30] sm:$0xff]  ;;  %vm972_vm4 = vcmask 1041408   ;;  %vm975_vm5 = vcmask 1045504  }
   0x2   :  { %v42_v1 = vld [vmem:[%s1480_s0] sm:$0xff]  ;;  %1017 = vmatpush.msk.msra.mxu0 %vm52_vm0, %v11_v0  ;;  %v1094_v3 = vld [vmem:[%s1479_s1 + $0x18] sm:$0xff]  ;;  %97 = vmatpush.msra.mxu1 %v1089_v2  ;;  %v1106_v5 = vld [vmem:[%s1479_s1 + $0x10] sm:$0xff]  ;;  %vm1010_vm6 = vcmask 15360  }
   0x3   :  { %1018 = vmatmul.msk.f32.vlgmr.msra.gmra.mxu0 %vm45_vm1, %v42_v1  ;;  %143 = vmatpush.msra.mxu3 %v1094_v3  ;;  %v1111_v6 = vld [vmem:[%s1479_s1 + $0x28] sm:$0xff]  ;;  %v1125_v8 = vld [vmem:[%s1479_s1 + $0xa0] sm:$0xff]  ;;  %v1135_v10 = vld [vmem:[%s1479_s1 + $0x98] sm:$0xff] }
   0x4   :  { %98 = vmatpush.msra.mxu1 %v1101_v4  ;;  %v1118_v7 = vld [vmem:[%s1479_s1 + $0x8] sm:$0xff]  ;;  %119 = vmatpush.msra.mxu2 %v1125_v8  ;;  %v1143_v11 = vld [vmem:[%s1479_s1 + $0x60] sm:$0xff]  ;;  %v1152_v13 = vld [vmem:[%s1479_s1 + $0x90] sm:$0xff] }
   0x5   :  { %144 = vmatpush.msra.mxu3 %v1106_v5  ;;  %v1130_v9 = vld [vmem:[%s1479_s1 + $0x68] sm:$0xff]  ;;  %v1157_v14 = vld [vmem:[%s1479_s1 + $0x58] sm:$0xff]  ;;  %v1171_v15 = vld [vmem:[%s1479_s1 + $0x20] ss:$0 sm:$0xff] }
   0x6   :  { %99 = vmatpush.msra.mxu1 %v1111_v6  ;;  %189 = vmatpush.msrb.mxu0 %v1130_v9  ;;  %v43_v12 = vld [vmem:[%s1480_s0 + $0x8] sm:$0xff]  ;;  %v1187_v20 = vld [vmem:[%s1479_s1 + $0x50] sm:$0xff]  ;;  %v1194_v21 = vld [vmem:[%s1479_s1 + $0x80] sm:$0xff] }
   0x7   :  { %145 = vmatpush.msra.mxu3 %v1118_v7  ;;  %120 = vmatpush.msra.mxu2 %v1135_v10  ;;  %v1182_v19 = vld [vmem:[%s1479_s1 + $0x88] sm:$0xff]  ;;  %v1207_v23 = vld [vmem:[%s1479_s1 + $0x78] sm:$0xff]  ;;  %v1212_v24 = vld [vmem:[%s1479_s1 + $0x40] sm:$0xff] }
   0x8   :  { %172 = vmatpush.msrb.mxu1 %v1089_v2  ;;  %190 = vmatpush.msrb.mxu0 %v1143_v11  ;;  %v1199_v22 = vld [vmem:[%s1479_s1 + $0x48] sm:$0xff]  ;;  %v1230_v25 = vld [vmem:[%s1479_s1 + $0x70] ss:$0 sm:$0xff]  ;;  %v1247_v34 = vld [vmem:[%s1479_s1 + $0xb8] sm:$0xff] }
   0x9   :  { %214 = vmatpush.msrb.mxu3 %v1125_v8  ;;  %121 = vmatpush.msra.mxu2 %v1152_v13  ;;  %v1254_v35 = vld [vmem:[%s1479_s1 + $0xb0] sm:$0xff]  ;;  %v1261_v36 = vld [vmem:[%s1479_s1 + $0xa8] sm:$0xff]  ;;  %v1279_v39 = vld [vmem:[%s1479_s1 + $0xc0] ss:$0 sm:$0xff] }
   0xa   :  { %173 = vmatpush.msrb.mxu1 %v1101_v4  ;;  %191 = vmatpush.msrb.mxu0 %v1157_v14 }
   0xb   :  { %1019 = vmatmul.msk.f32.gmra.mxu0 %vm45_vm1, %v43_v12  ;;  %215 = vmatpush.msrb.mxu3 %v1135_v10 }
   0xc   :  { %174 = vmatpush.msrb.mxu1 %v1111_v6  ;;  %122 = vmatpush.msra.mxu2 %v1182_v19 }
   0xd   :  { %216 = vmatpush.msrb.mxu3 %v1152_v13  ;;  %192 = vmatpush.msrb.mxu0 %v1187_v20 }
   0xe   :  { %123 = vmatpush.msra.mxu2 %v1194_v21 }
   0xf   :  { %217 = vmatpush.msrb.mxu3 %v1182_v19  ;;  %193 = vmatpush.msrb.mxu0 %v1199_v22 }
  0x10   :  { %124 = vmatpush.msra.mxu2 %v1207_v23 }
  0x11   :  { %218 = vmatpush.msrb.mxu3 %v1194_v21  ;;  %194 = vmatpush.msrb.mxu0 %v1212_v24 }
  0x12   :  { %240 = vmatpush.msrb.mxu2 %v1247_v34 }
  0x13   :  { %262 = vmatpush.msra.mxu0 %v1094_v3  ;;  %219 = vmatpush.msrb.mxu3 %v1207_v23 }
  0x14   :  { %241 = vmatpush.msrb.mxu2 %v1254_v35 }
  0x15   :  { %263 = vmatpush.msra.mxu0 %v1106_v5 }
  0x16   :  { %242 = vmatpush.msrb.mxu2 %v1261_v36 }
  0x17   :  { %264 = vmatpush.msra.mxu0 %v1118_v7 }
  0x80   :  { %v73_v16 = vpop.f32.mrf.mxu0 }
  0x81   :  { %v1174_v17 = vadd.f32 %v1171_v15, %v73_v16 }
  0x83   :  { %v79_v18 = vmax.f32 %v1174_v17, 0.0 }
  0x85   :  { %1020 = vmatmul.msk.f32.vlgmr.msra.gmra.mxu1 %vm80_vm2, %v79_v18  ;;  %1022 = vmatmul.msk.f32.vlgmr.msra.gmra.mxu3 %vm80_vm2, %v79_v18 }
  0x86   :  { %308 = vmatpush.msra.mxu3 %v1130_v9  ;;  %359 = vmatpush.msra.mxu1 %v1247_v34 }
  0x88   :  { %309 = vmatpush.msra.mxu3 %v1143_v11  ;;  %360 = vmatpush.msra.mxu1 %v1254_v35  ;;  %v1274_v37 = vpop.f32.mrf.mxu0 }
  0x8a   :  { %310 = vmatpush.msra.mxu3 %v1157_v14  ;;  %361 = vmatpush.msra.mxu1 %v1261_v36 }
  0x8c   :  { %311 = vmatpush.msra.mxu3 %v1187_v20 }
  0x8e   :  { %312 = vmatpush.msra.mxu3 %v1199_v22 }
  0x90   :  { %313 = vmatpush.msra.mxu3 %v1212_v24 }
 0x102   :  { %v101_v26 = vpop.f32.mrf.mxu1 }
 0x103   :  { %v102_v27 = vadd.f32 %v1230_v25, %v101_v26 }
 0x105   :  { %v104_v28 = vmax.f32 %v102_v27, 0.0 }
 0x107   :  { %1021 = vmatmul.msk.f32.vlgmr.msra.gmra.mxu2 %vm105_vm3, %v104_v28  ;;  %1024 = vmatmul.msk.f32.vlgmr.msrb.gmra.mxu0 %vm105_vm3, %v104_v28 }
 0x108   :  { %v147_v29 = vpop.f32.mrf.mxu3  ;;  %291 = vmatpush.msrb.mxu0 %v1089_v2  ;;  %333 = vmatpush.msra.mxu2 %v1125_v8 }
 0x109   :  { %v151_v30 = vrot.slane %v147_v29, 6 }
 0x10a   :  { %292 = vmatpush.msrb.mxu0 %v1101_v4  ;;  %334 = vmatpush.msra.mxu2 %v1135_v10 }
 0x10b   :  { %v153_v31 = vadd.f32 %v151_v30, %v1174_v17 }
 0x10c   :  { %293 = vmatpush.msrb.mxu0 %v1111_v6  ;;  %335 = vmatpush.msra.mxu2 %v1152_v13 }
 0x10d   :  { %v154_v32 = vmax.f32 %v153_v31, 0.0 }
 0x10e   :  { %336 = vmatpush.msra.mxu2 %v1182_v19 }
 0x10f   :  { %v156_v33 = vrot.slane %v154_v32, 2 }
 0x110   :  { %337 = vmatpush.msra.mxu2 %v1194_v21 }
 0x111   :  { %1023 = vmatmul.msk.f32.vlgmr.msrb.gmra.mxu1 %vm80_vm2, %v156_v33  ;;  %1027 = vmatmul.msk.f32.vlgmr.msra.gmra.mxu0 %vm80_vm2, %v156_v33 }
 0x112   :  { %381 = vmatpush.msra.mxu0 %v1094_v3  ;;  %410 = vmatpush.msrb.mxu1 %v1089_v2 }
 0x113   :  { %338 = vmatpush.msra.mxu2 %v1207_v23 }
 0x114   :  { %382 = vmatpush.msra.mxu0 %v1106_v5  ;;  %411 = vmatpush.msrb.mxu1 %v1101_v4 }
 0x116   :  { %383 = vmatpush.msra.mxu0 %v1118_v7  ;;  %412 = vmatpush.msrb.mxu1 %v1111_v6 }
 0x184   :  { %v196_v38 = vpop.f32.mrf.mxu0 }
 0x18a   :  { %v126_v40 = vpop.f32.mrf.mxu2 }
 0x18b   :  { %v1282_v41 = vadd.f32 %v1279_v39, %v126_v40  ;;  %v1355_v40 = vadd.f32 %v1171_v15, %v1274_v37 }
 0x18d   :  { %v129_v42 = vmax.f32 %v1282_v41, 0.0 }
 0x18e   :  { %v176_v43 = vpop.f32.mrf.mxu1  ;;  %v266_v44 = vpop.f32.mrf.mxu0 }
 0x18f   :  { %v177_v45 = vadd.f32 %v1230_v25, %v176_v43  ;;  %v270_v46 = vrot.slane %v266_v44, 4  ;;  %1026 = vmatmul.msk.f32.vlgmr.msrb.gmra.mxu2 %vm80_vm2, %v129_v42 }
 0x190   :  { %452 = vmatpush.msrb.mxu2 %v1125_v8 }
 0x191   :  { %v199_v47 = vadd.f32 %v196_v38, %v177_v45  ;;  %v272_v48 = vadd.f32 %v270_v46, %v1174_v17 }
 0x192   :  { %453 = vmatpush.msrb.mxu2 %v1135_v10 }
 0x193   :  { %v200_v49 = vmax.f32 %v199_v47, 0.0  ;;  %v273_v50 = vmax.f32 %v272_v48, 0.0 }
 0x194   :  { %454 = vmatpush.msrb.mxu2 %v1152_v13 }
 0x195   :  { %v275_v51 = vrot.slane %v273_v50, 4  ;;  %1025 = vmatmul.msk.f32.vlgmr.msrb.gmra.mxu3 %vm105_vm3, %v200_v49 }
 0x196   :  { %427 = vmatpush.msrb.mxu3 %v1130_v9  ;;  %455 = vmatpush.msrb.mxu2 %v1182_v19 }
 0x197   :  { %1028 = vmatmul.msk.f32.vlgmr.msrb.gmra.mxu0 %vm80_vm2, %v275_v51 }
 0x198   :  { %428 = vmatpush.msrb.mxu3 %v1143_v11  ;;  %478 = vmatpush.msrb.mxu0 %v1247_v34 }
 0x199   :  { %456 = vmatpush.msrb.mxu2 %v1194_v21 }
 0x19a   :  { %429 = vmatpush.msrb.mxu3 %v1157_v14  ;;  %479 = vmatpush.msrb.mxu0 %v1254_v35 }
 0x19b   :  { %457 = vmatpush.msrb.mxu2 %v1207_v23 }
 0x19c   :  { %430 = vmatpush.msrb.mxu3 %v1187_v20  ;;  %480 = vmatpush.msrb.mxu0 %v1261_v36 }
 0x19d   :  { %1029 = vmatmul.msk.f32.vlgmr.msra.gmra.mxu3 %vm105_vm3, %v200_v49 }
 0x19e   :  { %431 = vmatpush.msrb.mxu3 %v1199_v22 }
 0x19f   :  { %1032 = vmatmul.msk.f32.vlgmr.msra.gmra.mxu0 %vm80_vm2, %v275_v51 }
 0x1a0   :  { %432 = vmatpush.msrb.mxu3 %v1212_v24  ;;  %525 = vmatpush.msra.mxu0 %v1089_v2 }
 0x1a2   :  { %542 = vmatpush.msra.mxu3 %v1130_v9  ;;  %526 = vmatpush.msra.mxu0 %v1101_v4 }
 0x1a4   :  { %543 = vmatpush.msra.mxu3 %v1143_v11  ;;  %527 = vmatpush.msra.mxu0 %v1111_v6 }
 0x1a6   :  { %544 = vmatpush.msra.mxu3 %v1157_v14 }
 0x1a8   :  { %545 = vmatpush.msra.mxu3 %v1187_v20 }
 0x1aa   :  { %546 = vmatpush.msra.mxu3 %v1199_v22 }
 0x1ac   :  { %547 = vmatpush.msra.mxu3 %v1212_v24 }
 0x212   :  { %v244_v55 = vpop.f32.mrf.mxu2 }
 0x214   :  { %v295_v52 = vpop.f32.mrf.mxu0 }
 0x215   :  { %v296_v60 = vadd.f32 %v1230_v25, %v295_v52 }
 0x218   :  { %v221_v53 = vpop.f32.mrf.mxu3 }
 0x219   :  { %v222_v54 = vadd.f32 %v1279_v39, %v221_v53 }
 0x21b   :  { %v247_v56 = vadd.f32 %v244_v55, %v222_v54 }
 0x21c   :  { %v385_v57 = vpop.f32.mrf.mxu0 }
 0x21d   :  { %v248_v58 = vmax.f32 %v247_v56, 0.0  ;;  %v389_v59 = vrot.slane %v385_v57, 2 }
 0x21f   :  { %v391_v61 = vadd.f32 %v389_v59, %v1174_v17  ;;  %1031 = vmatmul.msk.f32.vlgmr.msra.gmra.mxu1 %vm80_vm2, %v248_v58  ;;  %v959_v32 = vrot.slane %v248_v58, 6 }
 0x220   :  { %v315_v62 = vpop.f32.mrf.mxu3  ;;  %500 = vmatpush.msra.mxu1 %v1094_v3 }
 0x221   :  { %v392_v63 = vmax.f32 %v391_v61, 0.0  ;;  %v318_v0 = vadd.f32 %v315_v62, %v296_v60  ;;  %v973_v44 = vsel %vm972_vm4, %v129_v42, %v959_v32 }
 0x222   :  { %501 = vmatpush.msra.mxu1 %v1106_v5 }
 0x223   :  { %v319_v1 = vmax.f32 %v318_v0, 0.0  ;;  %v394_v12 = vrot.slane %v392_v63, 6 }
 0x224   :  { %502 = vmatpush.msra.mxu1 %v1118_v7 }
 0x225   :  { %1030 = vmatmul.msk.f32.vlgmr.msra.gmra.mxu2 %vm105_vm3, %v319_v1  ;;  %1034 = vmatmul.msk.f32.vlgmr.msrb.gmra.mxu3 %vm105_vm3, %v319_v1 }
 0x226   :  { %567 = vmatpush.msra.mxu2 %v1125_v8  ;;  %661 = vmatpush.msrb.mxu3 %v1130_v9 }
 0x227   :  { %1033 = vmatmul.msk.f32.vlgmr.msrb.gmra.mxu1 %vm80_vm2, %v394_v12 }
 0x228   :  { %568 = vmatpush.msra.mxu2 %v1135_v10  ;;  %593 = vmatpush.msrb.mxu1 %v1247_v34 }
 0x229   :  { %662 = vmatpush.msrb.mxu3 %v1143_v11 }
 0x22a   :  { %569 = vmatpush.msra.mxu2 %v1152_v13  ;;  %594 = vmatpush.msrb.mxu1 %v1254_v35 }
 0x22b   :  { %663 = vmatpush.msrb.mxu3 %v1157_v14 }
 0x22c   :  { %570 = vmatpush.msra.mxu2 %v1182_v19  ;;  %595 = vmatpush.msrb.mxu1 %v1261_v36 }
 0x22d   :  { %664 = vmatpush.msrb.mxu3 %v1187_v20 }
 0x22e   :  { %571 = vmatpush.msra.mxu2 %v1194_v21 }
 0x22f   :  { %1037 = vmatmul.msk.f32.vlgmr.msra.gmra.mxu1 %vm80_vm2, %v394_v12  ;;  %665 = vmatpush.msrb.mxu3 %v1199_v22 }
 0x230   :  { %572 = vmatpush.msra.mxu2 %v1207_v23  ;;  %644 = vmatpush.msra.mxu1 %v1089_v2 }
 0x231   :  { %666 = vmatpush.msrb.mxu3 %v1212_v24 }
 0x232   :  { %645 = vmatpush.msra.mxu1 %v1101_v4 }
 0x234   :  { %646 = vmatpush.msra.mxu1 %v1111_v6 }
 0x29c   :  { %v363_v16 = vpop.f32.mrf.mxu1 }
 0x2a4   :  { %v414_v17 = vpop.f32.mrf.mxu1 }
 0x2a5   :  { %v415_v18 = vadd.f32 %v1230_v25, %v414_v17 }
 0x2a8   :  { %v340_v26 = vpop.f32.mrf.mxu2  ;;  %v434_v27 = vpop.f32.mrf.mxu3 }
 0x2a9   :  { %v341_v28 = vadd.f32 %v1279_v39, %v340_v26  ;;  %v437_v29 = vadd.f32 %v434_v27, %v415_v18 }
 0x2ab   :  { %v366_v30 = vadd.f32 %v363_v16, %v341_v28  ;;  %v438_v31 = vmax.f32 %v437_v29, 0.0  ;;  %v34_v16 = vld [vmem:[%s1479_s1 + $0xc8] sm:$0xff] }
 0x2ac   :  { %v504_v38 = vpop.f32.mrf.mxu1 }
 0x2ad   :  { %v367_v33 = vmax.f32 %v366_v30, 0.0  ;;  %1035 = vmatmul.msk.f32.vlgmr.msrb.gmra.mxu2 %vm105_vm3, %v438_v31  ;;  %1039 = vmatmul.msk.f32.vlgmr.msra.gmra.mxu3 %vm105_vm3, %v438_v31  ;;  %v507_v45 = vadd.f32 %v504_v38, %v1355_v40 }
 0x2ae   :  { %686 = vmatpush.msrb.mxu2 %v1125_v8  ;;  %780 = vmatpush.msra.mxu3 %v1130_v9 }
 0x2af   :  { %v961_v43 = vrot.slane %v367_v33, 4  ;;  %1036 = vmatmul.msk.f32.vlgmr.msrb.gmra.mxu0 %vm80_vm2, %v367_v33  ;;  %v508_v15 = vmax.f32 %v507_v45, 0.0 }
 0x2b0   :  { %615 = vmatpush.msrb.mxu0 %v1094_v3  ;;  %687 = vmatpush.msrb.mxu2 %v1135_v10 }
 0x2b1   :  { %781 = vmatpush.msra.mxu3 %v1143_v11  ;;  %v974_v46 = vsel %vm52_vm0, %v973_v44, %v961_v43 }
 0x2b2   :  { %616 = vmatpush.msrb.mxu0 %v1106_v5  ;;  %688 = vmatpush.msrb.mxu2 %v1152_v13 }
 0x2b3   :  { %782 = vmatpush.msra.mxu3 %v1157_v14 }
 0x2b4   :  { %617 = vmatpush.msrb.mxu0 %v1118_v7  ;;  %689 = vmatpush.msrb.mxu2 %v1182_v19 }
 0x2b5   :  { %783 = vmatpush.msra.mxu3 %v1187_v20 }
 0x2b6   :  { %690 = vmatpush.msrb.mxu2 %v1194_v21 }
 0x2b7   :  { %1038 = vmatmul.msk.f32.vlgmr.msra.gmra.mxu0 %vm80_vm2, %v508_v15  ;;  %784 = vmatpush.msra.mxu3 %v1199_v22 }
 0x2b8   :  { %712 = vmatpush.msra.mxu0 %v1247_v34  ;;  %691 = vmatpush.msrb.mxu2 %v1207_v23 }
 0x2b9   :  { %785 = vmatpush.msra.mxu3 %v1212_v24 }
 0x2ba   :  { %713 = vmatpush.msra.mxu0 %v1254_v35 }
 0x2bc   :  { %714 = vmatpush.msra.mxu0 %v1261_v36 }
 0x2bf   :  { %1042 = vmatmul.msk.f32.vlgmr.msrb.gmra.mxu0 %vm80_vm2, %v508_v15 }
 0x2c0   :  { %763 = vmatpush.msrb.mxu0 %v1089_v2 }
 0x2c2   :  { %764 = vmatpush.msrb.mxu0 %v1101_v4 }
 0x2c4   :  { %765 = vmatpush.msrb.mxu0 %v1111_v6 }
 0x32c   :  { %v482_v37 = vpop.f32.mrf.mxu0 }
 0x330   :  { %v459_v41 = vpop.f32.mrf.mxu2  ;;  %v549_v51 = vpop.f32.mrf.mxu3 }
 0x331   :  { %v460_v42 = vadd.f32 %v1279_v39, %v459_v41  ;;  %v1062_v41 = vld [vmem:[%s1479_s1 + $0xe0] ss:$0 sm:$0xff] }
 0x333   :  { %v485_v47 = vadd.f32 %v482_v37, %v460_v42 }
 0x334   :  { %v529_v48 = vpop.f32.mrf.mxu0 }
 0x335   :  { %v486_v49 = vmax.f32 %v485_v47, 0.0  ;;  %v530_v50 = vadd.f32 %v1230_v25, %v529_v48 }
 0x337   :  { %v963_v52 = vrot.slane %v486_v49, 2  ;;  %v552_v53 = vadd.f32 %v549_v51, %v530_v50  ;;  %1041 = vmatmul.msk.f32.vlgmr.msrb.gmra.mxu1 %vm80_vm2, %v486_v49 }
 0x338   :  { %734 = vmatpush.msrb.mxu1 %v1094_v3 }
 0x339   :  { %v553_v54 = vmax.f32 %v552_v53, 0.0  ;;  %v1389_v55 = vsel %vm975_vm5, %v974_v46, %v963_v52 }
 0x33a   :  { %735 = vmatpush.msrb.mxu1 %v1106_v5 }
 0x33b   :  { %1040 = vmatmul.msk.f32.vlgmr.msra.gmra.mxu2 %vm105_vm3, %v553_v54  ;;  %1044 = vmatmul.msk.f32.vlgmr.msrb.gmra.mxu3 %vm105_vm3, %v553_v54 }
 0x33c   :  { %v619_v56 = vpop.f32.mrf.mxu0  ;;  %736 = vmatpush.msrb.mxu1 %v1118_v7  ;;  %805 = vmatpush.msra.mxu2 %v1125_v8 }
 0x33d   :  { %v623_v57 = vrot.slane %v619_v56, 6  ;;  %899 = vmatpush.msrb.mxu3 %v1130_v9 }
 0x33e   :  { %806 = vmatpush.msra.mxu2 %v1135_v10 }
 0x33f   :  { %v625_v58 = vadd.f32 %v623_v57, %v1355_v40  ;;  %900 = vmatpush.msrb.mxu3 %v1143_v11 }
 0x340   :  { %807 = vmatpush.msra.mxu2 %v1152_v13 }
 0x341   :  { %v626_v59 = vmax.f32 %v625_v58, 0.0  ;;  %901 = vmatpush.msrb.mxu3 %v1157_v14 }
 0x342   :  { %808 = vmatpush.msra.mxu2 %v1182_v19 }
 0x343   :  { %v628_v60 = vrot.slane %v626_v59, 2  ;;  %902 = vmatpush.msrb.mxu3 %v1187_v20 }
 0x344   :  { %809 = vmatpush.msra.mxu2 %v1194_v21 }
 0x345   :  { %1043 = vmatmul.msk.f32.vlgmr.msra.gmra.mxu1 %vm80_vm2, %v628_v60  ;;  %903 = vmatpush.msrb.mxu3 %v1199_v22 }
 0x346   :  { %831 = vmatpush.msra.mxu1 %v1247_v34  ;;  %810 = vmatpush.msra.mxu2 %v1207_v23 }
 0x347   :  { %904 = vmatpush.msrb.mxu3 %v1212_v24 }
 0x348   :  { %832 = vmatpush.msra.mxu1 %v1254_v35 }
 0x34a   :  { %833 = vmatpush.msra.mxu1 %v1261_v36 }
 0x34d   :  { %1047 = vmatmul.msk.f32.vlgmr.msrb.gmra.mxu1 %vm80_vm2, %v628_v60 }
 0x34e   :  { %882 = vmatpush.msrb.mxu1 %v1089_v2 }
 0x350   :  { %883 = vmatpush.msrb.mxu1 %v1101_v4 }
 0x352   :  { %884 = vmatpush.msrb.mxu1 %v1111_v6 }
 0x3b4   :  { %v597_v9 = vpop.f32.mrf.mxu1 }
 0x3be   :  { %v574_v11 = vpop.f32.mrf.mxu2  ;;  %v668_v62 = vpop.f32.mrf.mxu3 }
 0x3bf   :  { %v575_v14 = vadd.f32 %v1279_v39, %v574_v11 }
 0x3c1   :  { %v1417_v20 = vadd.f32 %v597_v9, %v575_v14 }
 0x3c2   :  { %v648_v22 = vpop.f32.mrf.mxu1 }
 0x3c3   :  { %v601_v24 = vmax.f32 %v1417_v20, 0.0  ;;  %v649_v61 = vadd.f32 %v1230_v25, %v648_v22 }
 0x3c5   :  { %v671_v63 = vadd.f32 %v668_v62, %v649_v61  ;;  %1046 = vmatmul.msk.f32.vlgmr.msra.gmra.mxu0 %vm80_vm2, %v601_v24 }
 0x3c6   :  { %853 = vmatpush.msra.mxu0 %v1094_v3 }
 0x3c7   :  { %v672_v2 = vmax.f32 %v671_v63, 0.0 }
 0x3c8   :  { %854 = vmatpush.msra.mxu0 %v1106_v5 }
 0x3c9   :  { %1045 = vmatmul.msk.f32.vlgmr.msrb.gmra.mxu2 %vm105_vm3, %v672_v2  ;;  %1049 = vmatmul.msk.f32.vlgmr.msra.gmra.mxu3 %vm105_vm3, %v672_v2 }
 0x3ca   :  { %v738_v4 = vpop.f32.mrf.mxu1  ;;  %855 = vmatpush.msra.mxu0 %v1118_v7  ;;  %924 = vmatpush.msrb.mxu2 %v1125_v8 }
 0x3cb   :  { %v742_v6 = vrot.slane %v738_v4, 4 }
 0x3cc   :  { %925 = vmatpush.msrb.mxu2 %v1135_v10 }
 0x3cd   :  { %v744_v0 = vadd.f32 %v742_v6, %v1355_v40 }
 0x3ce   :  { %926 = vmatpush.msrb.mxu2 %v1152_v13 }
 0x3cf   :  { %v745_v3 = vmax.f32 %v744_v0, 0.0 }
 0x3d0   :  { %927 = vmatpush.msrb.mxu2 %v1182_v19 }
 0x3d1   :  { %v747_v5 = vrot.slane %v745_v3, 4 }
 0x3d2   :  { %928 = vmatpush.msrb.mxu2 %v1194_v21 }
 0x3d3   :  { %1048 = vmatmul.msk.f32.vlgmr.msrb.gmra.mxu0 %vm80_vm2, %v747_v5 }
 0x3d4   :  { %950 = vmatpush.msrb.mxu0 %v1247_v34  ;;  %929 = vmatpush.msrb.mxu2 %v1207_v23  ;;  %v36_v34 = vld [vmem:[%s1479_s1 + $0xd8] sm:$0xff] }
 0x3d6   :  { %951 = vmatpush.msrb.mxu0 %v1254_v35  ;;  %v35_v35 = vld [vmem:[%s1479_s1 + $0xd0] sm:$0xff] }
 0x3d8   :  { %952 = vmatpush.msrb.mxu0 %v1261_v36 }
 0x3db   :  { %1052 = vmatmul.msk.f32.vlgmr.msra.gmra.mxu0 %vm80_vm2, %v747_v5 }
 0x442   :  { %v716_v7 = vpop.f32.mrf.mxu0 }
 0x44c   :  { %v693_v8 = vpop.f32.mrf.mxu2  ;;  %v787_v23 = vpop.f32.mrf.mxu3 }
 0x44d   :  { %v694_v10 = vadd.f32 %v1279_v39, %v693_v8 }
 0x44f   :  { %v719_v13 = vadd.f32 %v716_v7, %v694_v10 }
 0x450   :  { %v767_v19 = vpop.f32.mrf.mxu0 }
 0x451   :  { %v720_v1 = vmax.f32 %v719_v13, 0.0  ;;  %v768_v21 = vadd.f32 %v1230_v25, %v767_v19 }
 0x453   :  { %v790_v12 = vadd.f32 %v787_v23, %v768_v21  ;;  %1051 = vmatmul.msk.f32.vlgmr.msra.gmra.mxu1 %vm80_vm2, %v720_v1  ;;  %v965_v33 = vrot.slane %v720_v1, 6 }
 0x454   :  { %1000 = vmatpush.msra.mxu1 %v36_v34 }
 0x455   :  { %v791_v36 = vmax.f32 %v790_v12, 0.0  ;;  %v977_v15 = vsel %vm972_vm4, %v601_v24, %v965_v33 }
 0x456   :  { %1001 = vmatpush.msra.mxu1 %v35_v35 }
 0x457   :  { %1050 = vmatmul.msk.f32.vlgmr.msra.gmra.mxu2 %vm105_vm3, %v791_v36  ;;  %1054 = vmatmul.msk.f32.vlgmr.msrb.gmra.mxu3 %vm105_vm3, %v791_v36 }
 0x458   :  { %v857_v17 = vpop.f32.mrf.mxu0  ;;  %1002 = vmatpush.msra.mxu1 %v34_v16 }
 0x459   :  { %v861_v18 = vrot.slane %v857_v17, 2 }
 0x45b   :  { %v863_v26 = vadd.f32 %v861_v18, %v1355_v40 }
 0x45d   :  { %v864_v27 = vmax.f32 %v863_v26, 0.0 }
 0x45f   :  { %v866_v28 = vrot.slane %v864_v27, 6 }
 0x461   :  { %1053 = vmatmul.msk.f32.vlgmr.msrb.gmra.mxu1 %vm80_vm2, %v866_v28 }
 0x469   :  { %1057 = vmatmul.msk.f32.vlgmr.msra.gmra.mxu1 %vm80_vm2, %v1389_v55 }
 0x4d0   :  { %v835_v29 = vpop.f32.mrf.mxu1 }
 0x4da   :  { %v812_v30 = vpop.f32.mrf.mxu2  ;;  %v906_v45 = vpop.f32.mrf.mxu3 }
 0x4db   :  { %v813_v31 = vadd.f32 %v1279_v39, %v812_v30 }
 0x4dd   :  { %v838_v32 = vadd.f32 %v835_v29, %v813_v31 }
 0x4de   :  { %v886_v38 = vpop.f32.mrf.mxu1 }
 0x4df   :  { %v839_v43 = vmax.f32 %v838_v32, 0.0  ;;  %v887_v44 = vadd.f32 %v1230_v25, %v886_v38 }
 0x4e1   :  { %v967_v46 = vrot.slane %v839_v43, 4  ;;  %v909_v40 = vadd.f32 %v906_v45, %v887_v44  ;;  %1056 = vmatmul.msk.f32.vlgmr.msrb.gmra.mxu0 %vm80_vm2, %v839_v43 }
 0x4e3   :  { %v910_v37 = vmax.f32 %v909_v40, 0.0  ;;  %v978_v42 = vsel %vm52_vm0, %v977_v15, %v967_v46 }
 0x4e5   :  { %1055 = vmatmul.msk.f32.vlgmr.msrb.gmra.mxu2 %vm105_vm3, %v910_v37 }
 0x4e6   :  { %v1004_v47 = vpop.f32.mrf.mxu1 }
 0x4e7   :  { %v1005_v25 = vadd.f32 %v1062_v41, %v1004_v47 }
 0x4e9   :  { %1011 = vst.msk [vmem:[%s1481_s2] sm:$0xff] %vm1010_vm6, %v1005_v25 }
 0x55e   :  { %v954_v50 = vpop.f32.mrf.mxu0 }
 0x568   :  { %v931_v48 = vpop.f32.mrf.mxu2 }
 0x569   :  { %v932_v49 = vadd.f32 %v1279_v39, %v931_v48 }
 0x56b   :  { %v957_v51 = vadd.f32 %v954_v50, %v932_v49 }
 0x56d   :  { %v958_v52 = vmax.f32 %v957_v51, 0.0 }
 0x56f   :  { %v970_v53 = vrot.slane %v958_v52, 2 }
 0x571   :  { %v979_v54 = vsel %vm975_vm5, %v978_v42, %v970_v53 }
 0x572   :  { %1058 = vmatmul.msk.f32.gmra.mxu1 %vm80_vm2, %v979_v54 }
 0x5ef   :  { %v1007_v55 = vpop.f32.mrf.mxu1 }
 0x5f0   :  { %v1008_v56 = vadd.f32 %v1062_v41, %v1007_v55 }
 0x5f2   :  { %1012 = vst.msk [vmem:[%s1481_s2 + $0x8] sm:$0xff] %vm1010_vm6, %v1008_v56 }

</bundles_post_ra>
